<compile_context>
chip_gen: v6e
topology: v6e:2x2x1
jax: 0.10.0
libtpu: 0.0.40
codegen_flags: <defaults>
</compile_context>

<pallas_src>
import functools

import jax
import jax.numpy as jnp
from jax import lax
from jax.experimental import pallas as pl
from jax.experimental.pallas import tpu as pltpu

_LANE = 128
_SUBLANE = 8


def _expert_kernel(x_ref, w_aug_ref, b1_ref, w2t_ref, b2_ref, w3r_ref, b3_ref,
                   o_ref, *, seg_len, nvalid_fn, mask_rows):
    """One grid cell.

    x_ref : (R, 36) f32 rows (R tokens of one batch, or TB batches x N tokens
            flattened).  o_ref : (1, TB) f32 output block (TB == 1 for the
            token-tiled path; resident across the inner grid axis).
    """
    j = pl.program_id(1)

    @pl.when(j == 0)
    def _init():
        o_ref[...] = jnp.zeros(o_ref.shape, o_ref.dtype)

    x = x_ref[...]                                     # (R, F) f32
    rows = x.shape[0]
    n_seg = o_ref.shape[-1]
    hid1 = b1_ref.shape[0]

    # Fused first layer + gate extraction (one MXU pass, lane-dense output):
    #   rows [0, hid1) of w_aug = W1, row hid1 = one_hot(last feature).
    h_aug = lax.dot_general(
        w_aug_ref[...], x,
        dimension_numbers=(((1,), (1,)), ((), ())),
        preferred_element_type=jnp.float32)            # (hid1 + 1, R)
    fwl = h_aug[hid1:hid1 + 1, :]                      # (1, R)  gate
    h1 = jnp.maximum(h_aug[0:hid1, :] + b1_ref[...], 0.0)         # (16, R)

    h2 = jnp.dot(w2t_ref[...], h1, preferred_element_type=jnp.float32)  # (4, R)
    h2 = jax.nn.sigmoid(h2 + b2_ref[...])

    # Linear(4,1) folded into a per-token scalar row, then gated.
    k = jnp.dot(w3r_ref[...], h2, preferred_element_type=jnp.float32) + b3_ref[...]
    c = fwl * k                                        # (1, R) contribution/token

    if mask_rows:
        # Zero contributions of padded rows (partial last tile).  Masking the
        # *product* keeps NaN/Inf garbage from the padded region out of the sum.
        nvalid = nvalid_fn(pl.program_id(0), j)
        lane = lax.broadcasted_iota(jnp.int32, (1, rows), 1)
        c = jnp.where(lane < nvalid, c, 0.0)

    if n_seg == 1:
        # Token-tiled path: accumulate this batch's partial sum.
        o_ref[...] += jnp.sum(c, axis=1, keepdims=True)
    else:
        # Flattened small-N path: per-batch segment sums via one MXU matmul
        # against a {0,1} segment-indicator matrix (division-free construction).
        row = lax.broadcasted_iota(jnp.int32, (rows, 1), 0)
        col = lax.broadcasted_iota(jnp.int32, (1, n_seg), 1)
        lo = col * seg_len
        seg = jnp.where((row >= lo) & (row < lo + seg_len), 1.0, 0.0)   # (R, TB)
        o_ref[...] += jnp.dot(c, seg, preferred_element_type=jnp.float32)


def _vmem_limit_bytes(rows, n_seg):
    """Padding-aware VMEM budget: an (R, 36) f32 tile occupies R*128*4 bytes."""
    f32 = 4
    pr = pl.cdiv(rows, _SUBLANE) * _SUBLANE
    pc = pl.cdiv(rows, _LANE) * _LANE
    pseg = max(pl.cdiv(n_seg, _LANE) * _LANE, _LANE)
    x_buf = 2 * pr * _LANE * f32          # double-buffered streamed x block
    interm = 128 * pc * f32               # transposed intermediates (<=~128 sublane rows)
    seg = (3 * pr * pseg * f32) if n_seg > 1 else 0
    misc = 2 << 20                        # resident weights, output blocks, slack
    total = int((x_buf + interm + seg + misc) * 1.4)
    return min(max(total, 32 << 20), 48 << 20)   # stay inside v7x's 64 MiB VMEM


def expert_forward(x, params, *, token_tile=16384, small_n_threshold=512):
    """Faulty_ExpertModel.forward: x (B, N, 36) f32 -> (B, 1) f32."""
    W1, b1, W2, b2, W3, b3 = params
    B, N, F = x.shape
    if x.dtype != jnp.float32:
        x = x.astype(jnp.float32)

    # Small resident operands (stay in VMEM, kept f32).
    gate_row = jnp.zeros((1, F), jnp.float32).at[0, F - 1].set(1.0)
    w_aug = jnp.concatenate([W1.astype(jnp.float32), gate_row], axis=0)   # (17, 36)
    b1c = b1.reshape(-1, 1).astype(jnp.float32)        # (16, 1)
    w2t = W2.astype(jnp.float32)                       # (4, 16)
    b2c = b2.reshape(-1, 1).astype(jnp.float32)        # (4, 1)
    w3r = W3.reshape(1, -1).astype(jnp.float32)        # (1, 4)
    b3c = b3.reshape(1, 1).astype(jnp.float32)         # (1, 1)
    weights = (w_aug, b1c, w2t, b2c, w3r, b3c)
    w_specs = [pl.BlockSpec(w.shape, lambda i, j: (0, 0)) for w in weights]
    sem = ("parallel", "arbitrary")

    if N <= small_n_threshold:
        # ================= flattened-batch path (small N) =====================
        total_rows = B * N
        if total_rows <= 4096 and B <= 256:
            tb, n_bt = B, 1                         # single grid step
        else:
            tb = int(min(128, max(8, (2048 // N) // 8 * 8)))   # multiple of 8
            n_bt = pl.cdiv(B, tb)
        rows = tb * N
        x_flat = x.reshape(B * N, F)                # free (metadata-only) reshape
        mask_rows = (B % tb) != 0

        def nvalid_fn(i, j):
            return total_rows - i * rows

        out = pl.pallas_call(
            functools.partial(_expert_kernel, seg_len=N, nvalid_fn=nvalid_fn,
                              mask_rows=mask_rows),
            out_shape=jax.ShapeDtypeStruct((n_bt, 1, tb), jnp.float32),
            grid=(n_bt, 1),
            in_specs=[pl.BlockSpec((rows, F), lambda i, j: (i, 0))] + w_specs,
            out_specs=pl.BlockSpec((None, 1, tb), lambda i, j: (i, 0, 0)),
            compiler_params=pltpu.CompilerParams(
                dimension_semantics=sem,
                vmem_limit_bytes=_vmem_limit_bytes(rows, tb)),
        )(x_flat, *weights)
        return out.reshape(n_bt * tb)[:B].reshape(B, 1)

    # =================== token-tiled path (large N) ===========================
    tn = int(min(N, token_tile))                      # v6e can go to 32k+
    if tn < N:
        tn = max(_SUBLANE, (tn // _SUBLANE) * _SUBLANE)
    n_tiles = pl.cdiv(N, tn)
    # v7x megacore: with B == 1 the batch axis cannot be sharded across the two
    # TensorCores -> split the token reduction into two parallel partial sums.
    split = 2 if (B == 1 and n_tiles >= 2) else 1
    subtiles = pl.cdiv(n_tiles, split)
    mask_rows = (N % tn != 0) or (split > 1)

    def x_map(o, j):
        tile = (o % split) * subtiles + j
        if split > 1:
            tile = jnp.minimum(tile, n_tiles - 1)     # clamp padded grid cells
        return (o // split, tile, 0)

    def nvalid_fn(o, j):
        return N - ((o % split) * subtiles + j) * tn

    out = pl.pallas_call(
        functools.partial(_expert_kernel, seg_len=tn, nvalid_fn=nvalid_fn,
                          mask_rows=mask_rows),
        out_shape=jax.ShapeDtypeStruct((B * split, 1, 1), jnp.float32),
        grid=(B * split, subtiles),
        in_specs=[pl.BlockSpec((None, tn, F), x_map)] + w_specs,
        out_specs=pl.BlockSpec((None, 1, 1), lambda o, j: (o, 0, 0)),
        compiler_params=pltpu.CompilerParams(
            dimension_semantics=sem,
            vmem_limit_bytes=_vmem_limit_bytes(tn, 1)),
    )(x, *weights)
    return out.reshape(B, split).sum(axis=1, keepdims=True)


def init_params(key):
    """Torch-like nn.Linear init: W (out, in), b (out,), U(-1/sqrt(fan_in), +)."""
    def linear(k, fan_in, fan_out):
        kw, kb = jax.random.split(k)
        bound = 1.0 / (fan_in ** 0.5)
        W = jax.random.uniform(kw, (fan_out, fan_in), jnp.float32, -bound, bound)
        b = jax.random.uniform(kb, (fan_out,), jnp.float32, -bound, bound)
        return W, b

    k1, k2, k3 = jax.random.split(key, 3)
    W1, b1 = linear(k1, 36, 16)
    W2, b2 = linear(k2, 16, 4)
    W3, b3 = linear(k3, 4, 1)
    return (W1, b1, W2, b2, W3, b3)


def reference_forward(x, params):
    """Pure-JAX f32 reference with exact PyTorch semantics."""
    W1, b1, W2, b2, W3, b3 = params
    hp = jax.lax.Precision.HIGHEST
    h = jnp.maximum(jnp.matmul(x, W1.T, precision=hp) + b1, 0.0)
    h = jax.nn.sigmoid(jnp.matmul(h, W2.T, precision=hp) + b2)
    k = jnp.matmul(h, W3.T, precision=hp) + b3        # (B, N, 1)
    return jnp.sum(x[:, :, -1:] * k, axis=1)          # (B, 1)


if __name__ == "__main__":
    key = jax.random.PRNGKey(0)
    kx, kp = jax.random.split(key)
    params = init_params(kp)

    def check(b, n, **kw):
        xi = jax.random.normal(jax.random.fold_in(kx, 1000 * b + n),
                               (b, n, 36), jnp.float32)
        oi = jax.block_until_ready(expert_forward(xi, params, **kw))
        ri = reference_forward(xi, params)
        assert oi.shape == (b, 1), (oi.shape, b)
        # Tolerance is robust to whichever f32-matmul decomposition Mosaic picks;
        # structural bugs would be orders of magnitude larger.
        assert jnp.allclose(oi, ri, atol=5e-3, rtol=5e-3), \
            (b, n, float(jnp.max(jnp.abs(oi - ri))))

    # Primary small shape (matches the module's intended (B, N, 36) use).
    check(2, 8)
    # Exercise the remaining code paths at modest shapes.
    check(300, 8)                       # flattened path, tiled + partial batch tile
    check(2, 1300, token_tile=512)      # token-tiled path, partial last token tile
    check(1, 1300, token_tile=512)      # B == 1 -> 2-way token split (megacore)

    print("KERNEL_OK")
</pallas_src>

<mosaic_0001>
module attributes {stable_mosaic.version = 11 : i64} {
  func.func @_expert_kernel(%arg0: i32, %arg1: i32, %arg2: memref<16x36xf32, #tpu.memory_space<vmem>>, %arg3: memref<17x36xf32, #tpu.memory_space<vmem>>, %arg4: memref<16x1xf32, #tpu.memory_space<vmem>>, %arg5: memref<4x16xf32, #tpu.memory_space<vmem>>, %arg6: memref<4x1xf32, #tpu.memory_space<vmem>>, %arg7: memref<1x4xf32, #tpu.memory_space<vmem>>, %arg8: memref<1x1xf32, #tpu.memory_space<vmem>>, %arg9: memref<1x1x2xf32, #tpu.memory_space<vmem>>) attributes {dimension_semantics = [#tpu.dimension_semantics<parallel>, #tpu.dimension_semantics<arbitrary>], iteration_bounds = array<i64: 1, 1>, scalar_prefetch = 0 : i64, scratch_operands = 0 : i64, tpu.core_type = #tpu.core_type<tc>, window_params = [{transform_indices = @transform_0, window_bounds = array<i64: 16, 36>}, {pipeline_mode = #tpu.pipeline_mode<synchronous>, transform_indices = @transform_1, window_bounds = array<i64: 17, 36>}, {pipeline_mode = #tpu.pipeline_mode<synchronous>, transform_indices = @transform_2, window_bounds = array<i64: 16, 1>}, {pipeline_mode = #tpu.pipeline_mode<synchronous>, transform_indices = @transform_3, window_bounds = array<i64: 4, 16>}, {pipeline_mode = #tpu.pipeline_mode<synchronous>, transform_indices = @transform_4, window_bounds = array<i64: 4, 1>}, {pipeline_mode = #tpu.pipeline_mode<synchronous>, transform_indices = @transform_5, window_bounds = array<i64: 1, 4>}, {pipeline_mode = #tpu.pipeline_mode<synchronous>, transform_indices = @transform_6, window_bounds = array<i64: 1, 1>}, {transform_indices = @transform_7, window_bounds = array<i64: 1, 1, 2>}]} {
    %c0_i32 = arith.constant 0 : i32
    %0 = arith.cmpi eq, %arg1, %c0_i32 : i32
    %1 = arith.extui %0 : i1 to i32
    %c0_i32_0 = arith.constant 0 : i32
    %2 = arith.cmpi ne, %1, %c0_i32_0 : i32
    scf.if %2 {
      %cst_28 = arith.constant 0.000000e+00 : f32
      %52 = vector.broadcast %cst_28 : f32 to vector<1x2xf32>
      %c0_29 = arith.constant 0 : index
      %c0_30 = arith.constant 0 : index
      %c0_31 = arith.constant 0 : index
      %53 = vector.load %arg9[%c0_29, %c0_30, %c0_31] : memref<1x1x2xf32, #tpu.memory_space<vmem>>, vector<1x1x2xf32>
      %54 = vector.shape_cast %53 : vector<1x1x2xf32> to vector<1x2xf32>
      %55 = vector.shape_cast %52 : vector<1x2xf32> to vector<1x1x2xf32>
      tpu.vector_store %arg9[%c0_29, %c0_30, %c0_31], %55 {strides = array<i32>} : memref<1x1x2xf32, #tpu.memory_space<vmem>>, vector<1x1x2xf32>,
    } else {
    }
    %c0 = arith.constant 0 : index
    %c0_1 = arith.constant 0 : index
    %3 = vector.load %arg2[%c0, %c0_1] : memref<16x36xf32, #tpu.memory_space<vmem>>, vector<16x36xf32>
    %c0_2 = arith.constant 0 : index
    %c0_3 = arith.constant 0 : index
    %4 = vector.load %arg3[%c0_2, %c0_3] : memref<17x36xf32, #tpu.memory_space<vmem>>, vector<17x36xf32>
    %cst = arith.constant dense<0.000000e+00> : vector<17x16xf32>
    %5 = tpu.matmul %4, %3, %cst {dimension_numbers = #tpu.dot_dimension_numbers<[1], [1], [0], [0], [0, 0, 1, 0], [], []>} : vector<17x36xf32>, vector<16x36xf32>, vector<17x16xf32> -> vector<17x16xf32>
    %6 = vector.extract_strided_slice %5 {offsets = [16, 0], sizes = [1, 16], strides = [1, 1]} : vector<17x16xf32> to vector<1x16xf32>
    %7 = vector.extract_strided_slice %5 {offsets = [0, 0], sizes = [16, 16], strides = [1, 1]} : vector<17x16xf32> to vector<16x16xf32>
    %c0_4 = arith.constant 0 : index
    %c0_5 = arith.constant 0 : index
    %8 = vector.load %arg4[%c0_4, %c0_5] : memref<16x1xf32, #tpu.memory_space<vmem>>, vector<16x1xf32>
    %9 = vector.broadcast %8 : vector<16x1xf32> to vector<16x16xf32>
    %10 = arith.addf %7, %9 : vector<16x16xf32>
    %cst_6 = arith.constant 0.000000e+00 : f32
    %11 = vector.broadcast %cst_6 : f32 to vector<16x16xf32>
    %12 = arith.maximumf %10, %11 : vector<16x16xf32>
    %c0_7 = arith.constant 0 : index
    %c0_8 = arith.constant 0 : index
    %13 = vector.load %arg5[%c0_7, %c0_8] : memref<4x16xf32, #tpu.memory_space<vmem>>, vector<4x16xf32>
    %cst_9 = arith.constant dense<0.000000e+00> : vector<4x16xf32>
    %14 = tpu.matmul %13, %12, %cst_9 {dimension_numbers = #tpu.dot_dimension_numbers<[1], [0], [0], [1], [0, 0, 1, 1], [], []>} : vector<4x16xf32>, vector<16x16xf32>, vector<4x16xf32> -> vector<4x16xf32>
    %c0_10 = arith.constant 0 : index
    %c0_11 = arith.constant 0 : index
    %15 = vector.load %arg6[%c0_10, %c0_11] : memref<4x1xf32, #tpu.memory_space<vmem>>, vector<4x1xf32>
    %16 = vector.broadcast %15 : vector<4x1xf32> to vector<4x16xf32>
    %17 = arith.addf %14, %16 : vector<4x16xf32>
    %18 = arith.negf %17 : vector<4x16xf32>
    %19 = math.exp %18 : vector<4x16xf32>
    %cst_12 = arith.constant 1.000000e+00 : f32
    %20 = vector.broadcast %cst_12 : f32 to vector<4x16xf32>
    %21 = arith.addf %20, %19 : vector<4x16xf32>
    %22 = arith.divf %20, %21 : vector<4x16xf32>
    %c0_13 = arith.constant 0 : index
    %c0_14 = arith.constant 0 : index
    %23 = vector.load %arg7[%c0_13, %c0_14] : memref<1x4xf32, #tpu.memory_space<vmem>>, vector<1x4xf32>
    %cst_15 = arith.constant dense<0.000000e+00> : vector<1x16xf32>
    %24 = tpu.matmul %23, %22, %cst_15 {dimension_numbers = #tpu.dot_dimension_numbers<[1], [0], [0], [1], [0, 0, 1, 1], [], []>} : vector<1x4xf32>, vector<4x16xf32>, vector<1x16xf32> -> vector<1x16xf32>
    %c0_16 = arith.constant 0 : index
    %c0_17 = arith.constant 0 : index
    %25 = vector.load %arg8[%c0_16, %c0_17] : memref<1x1xf32, #tpu.memory_space<vmem>>, vector<1x1xf32>
    %26 = vector.broadcast %25 : vector<1x1xf32> to vector<1x16xf32>
    %27 = arith.addf %24, %26 : vector<1x16xf32>
    %28 = arith.mulf %6, %27 : vector<1x16xf32>
    %29 = tpu.iota {dimensions = array<i32: 0>} : vector<16x1xi32>
    %30 = tpu.iota {dimensions = array<i32: 1>} : vector<1x2xi32>
    %c8_i32 = arith.constant 8 : i32
    %31 = vector.broadcast %c8_i32 : i32 to vector<1x2xi32>
    %32 = arith.muli %30, %31 : vector<1x2xi32>
    %33 = vector.broadcast %29 : vector<16x1xi32> to vector<16x2xi32>
    %34 = vector.broadcast %32 : vector<1x2xi32> to vector<16x2xi32>
    %35 = arith.cmpi sge, %33, %34 : vector<16x2xi32>
    %c8_i32_18 = arith.constant 8 : i32
    %36 = vector.broadcast %c8_i32_18 : i32 to vector<1x2xi32>
    %37 = arith.addi %32, %36 : vector<1x2xi32>
    %38 = vector.broadcast %29 : vector<16x1xi32> to vector<16x2xi32>
    %39 = vector.broadcast %37 : vector<1x2xi32> to vector<16x2xi32>
    %40 = arith.cmpi slt, %38, %39 : vector<16x2xi32>
    %41 = arith.andi %35, %40 : vector<16x2xi1>
    %cst_19 = arith.constant 1.000000e+00 : f32
    %cst_20 = arith.constant 0.000000e+00 : f32
    %42 = vector.broadcast %cst_19 : f32 to vector<16x2xf32>
    %43 = vector.broadcast %cst_20 : f32 to vector<16x2xf32>
    %44 = arith.select %41, %42, %43 : vector<16x2xi1>, vector<16x2xf32>
    %c0_21 = arith.constant 0 : index
    %c0_22 = arith.constant 0 : index
    %c0_23 = arith.constant 0 : index
    %45 = vector.load %arg9[%c0_21, %c0_22, %c0_23] : memref<1x1x2xf32, #tpu.memory_space<vmem>>, vector<1x1x2xf32>
    %46 = vector.shape_cast %45 : vector<1x1x2xf32> to vector<1x2xf32>
    %cst_24 = arith.constant dense<0.000000e+00> : vector<1x2xf32>
    %47 = tpu.matmul %28, %44, %cst_24 {dimension_numbers = #tpu.dot_dimension_numbers<[1], [0], [0], [1], [0, 0, 1, 1], [], []>} : vector<1x16xf32>, vector<16x2xf32>, vector<1x2xf32> -> vector<1x2xf32>
    %48 = arith.addf %46, %47 : vector<1x2xf32>
    %c0_25 = arith.constant 0 : index
    %c0_26 = arith.constant 0 : index
    %c0_27 = arith.constant 0 : index
    %49 = vector.load %arg9[%c0_25, %c0_26, %c0_27] : memref<1x1x2xf32, #tpu.memory_space<vmem>>, vector<1x1x2xf32>
    %50 = vector.shape_cast %49 : vector<1x1x2xf32> to vector<1x2xf32>
    %51 = vector.shape_cast %48 : vector<1x2xf32> to vector<1x1x2xf32>
    tpu.vector_store %arg9[%c0_25, %c0_26, %c0_27], %51 {strides = array<i32>} : memref<1x1x2xf32, #tpu.memory_space<vmem>>, vector<1x1x2xf32>,
    return
  }
  func.func @transform_0(%arg0: i32, %arg1: i32) -> (i32, i32) {
    %c0_i32 = arith.constant 0 : i32
    %c0_i32_0 = arith.constant 0 : i32
    return %arg0, %c0_i32 : i32, i32
  }
  func.func @transform_1(%arg0: i32, %arg1: i32) -> (i32, i32) {
    %c0_i32 = arith.constant 0 : i32
    %c0_i32_0 = arith.constant 0 : i32
    %c0_i32_1 = arith.constant 0 : i32
    return %c0_i32, %c0_i32_0 : i32, i32
  }
  func.func @transform_2(%arg0: i32, %arg1: i32) -> (i32, i32) {
    %c0_i32 = arith.constant 0 : i32
    %c0_i32_0 = arith.constant 0 : i32
    %c0_i32_1 = arith.constant 0 : i32
    return %c0_i32, %c0_i32_0 : i32, i32
  }
  func.func @transform_3(%arg0: i32, %arg1: i32) -> (i32, i32) {
    %c0_i32 = arith.constant 0 : i32
    %c0_i32_0 = arith.constant 0 : i32
    %c0_i32_1 = arith.constant 0 : i32
    return %c0_i32, %c0_i32_0 : i32, i32
  }
  func.func @transform_4(%arg0: i32, %arg1: i32) -> (i32, i32) {
    %c0_i32 = arith.constant 0 : i32
    %c0_i32_0 = arith.constant 0 : i32
    %c0_i32_1 = arith.constant 0 : i32
    return %c0_i32, %c0_i32_0 : i32, i32
  }
  func.func @transform_5(%arg0: i32, %arg1: i32) -> (i32, i32) {
    %c0_i32 = arith.constant 0 : i32
    %c0_i32_0 = arith.constant 0 : i32
    %c0_i32_1 = arith.constant 0 : i32
    return %c0_i32, %c0_i32_0 : i32, i32
  }
  func.func @transform_6(%arg0: i32, %arg1: i32) -> (i32, i32) {
    %c0_i32 = arith.constant 0 : i32
    %c0_i32_0 = arith.constant 0 : i32
    %c0_i32_1 = arith.constant 0 : i32
    return %c0_i32, %c0_i32_0 : i32, i32
  }
  func.func @transform_7(%arg0: i32, %arg1: i32) -> (i32, i32, i32) {
    %c0_i32 = arith.constant 0 : i32
    %c0_i32_0 = arith.constant 0 : i32
    %c0_i32_1 = arith.constant 0 : i32
    return %arg0, %c0_i32, %c0_i32_0 : i32, i32, i32
  }
}

</mosaic_0001>

<bundles_post_ra>
// kernel: tpu_custom_call.1
= control target key start
LH: loop header
LB: loop body
LE: loop exit
PB: predicated region body
PF: predicated region fallthrough
CT: control target
= control target key end

     0   :  { %s675_s0 = inlined_call_operand.hbm [shape: f32[16,36], index: 0, kind: input, shape index: {}]   ;;  %s676_s1 = inlined_call_operand.vmem [shape: f32[17,36], index: 1, kind: input, shape index: {}]   ;;  %s677_s2 = inlined_call_operand.vmem [shape: f32[16,1], index: 2, kind: input, shape index: {}]   ;;  %s678_s3 = inlined_call_operand.vmem [shape: f32[4,16], index: 3, kind: input, shape index: {}]   ;;  %s679_s4 = inlined_call_operand.vmem [shape: f32[4,1], index: 4, kind: input, shape index: {}]   ;;  %s680_s5 = inlined_call_operand.vmem [shape: f32[1,4], index: 5, kind: input, shape index: {}]   ;;  %s681_s6 = inlined_call_operand.<no memory space> [shape: f32[1,1], index: 6, kind: input, shape index: {}]   ;;  %s682_s7 = inlined_call_operand.hbm [shape: f32[1,1,2], index: 7, kind: output, shape index: {}]  }
   0x1   :  { %v12_v0 = vstv %s681_s6 }
   0x2   :  { %13 = vst [vmem:[#allocation2] sm:$0x1] %v12_v0 }
   0x3   :  { %14 = vsyncpa [#allocation4], 0 }
   0x4   :  { %15 = vsyncpa [#allocation5], 0  ;;  %s565_s26 = smov [#allocation3]  }
   0x5   :  { %s21_s27 = sshll.u32 %s565_s26, 4  ;;  %s22_s27 = int_to_ptr.vmem [resolvable:$true] %s21_s27 }
   0x6   :  { %s529_s28 = scalar_lea.vmem %s22_s27, 256  ;;  %p534_p1 = scmp.lt.s32.totalorder %s22_s27, %s22_s27 }
   0x7   :  { %p530_p0 = scmp.ne.s32.totalorder %s22_s27, %s529_s28  ;;  %p535_p2 = scmp.lt.s32.totalorder %s529_s28, %s529_s28 }
   0x9   :  { %p536_p3 = por %p535_p2, %p534_p1 }
   0xb   :  { %p537_p4 = pnand %p536_p3, %p530_p0 }
   0xd   :  { %540 = shalt.err (!%p537_p4)
}
   0xe   :  { %s566_s29 = smov 128   ;;  %s567_s30 = smov 8  }
   0xf   :  { %27 = dma.hbm_to_vmem [thread:$0]  %s675_s0, 256, %s22_s27, [#allocation4], %s566_s29, %s566_s29, %s567_s30  }
  0x10   :  { %561 = dma.done.wait [#allocation4], 256  }
  0x11   :  { %562 = vsyncadd [#allocation4], 4294967040  ;;  %v568_v1 = vmov 0.0   ;;  %vm569_vm0 = vmmov 0   ;;  %v570_v2 = vmov 0   ;;  %vm54_vm1 = vcmask 293888  }
  0x12   :  { %475 = vmatprep.subr.mxu0 %v568_v1  ;;  %479 = vmatprep.mubr.msk.f32.mxu0 %vm569_vm0, %v568_v1  ;;  %v50_v3 = vld [vmem:[#allocation3 + $0x8] sm:$0xff]  ;;  %v49_v5 = vld [vmem:[#allocation3] sm:$0xff]  ;;  %v254_v10 = vld [vmem:[#allocation2] sm:$0x1]  ;;  %vm173_vm2 = vcmask 130048   ;;  %vm268_vm3 = vcmask 1043456   ;;  %v260_v32 = vlaneseq }
  0x13   :  { %515 = vset.pattern.permute.xlu0 %v570_v2  ;;  %488 = vmatprep.subr.mxu1 %v568_v1  ;;  %v151_v4 = vld [vmem:[%s677_s2 + $0x8] sm:$0xff]  ;;  %v150_v6 = vld [vmem:[%s677_s2] sm:$0xff]  ;;  %v53_v22 = vld [vmem:[%s676_s1 + $0x10] sm:$0x1]  ;;  %vm264_vm4 = vcmask 31744   ;;  %v571_v39 = vmov 1.0  }
  0x14   :  { %492 = vmatprep.mubr.msk.f32.mxu1 %vm569_vm0, %v568_v1  ;;  %516 = vset.pattern.permute.xlu1 %v570_v2  ;;  %v51_v7 = vld [vmem:[%s676_s1] sm:$0xff]  ;;  %v52_v8 = vld [vmem:[%s676_s1 + $0x8] sm:$0xff]  ;;  %v347_v33 = vand.u32 127, %v260_v32  ;;  %v261_v34 = vshrl.u32 %v260_v32, 7  ;;  %vm47_vm11 = vcmask 8192   ;;  %s572_s1 = smov [#allocation6]  }
  0x15   :  { %476 = vmatpush3.xpose.msk.msra.mxu0 %vm54_vm1, %v50_v3  ;;  %159 = vperm.xlu0 %515, %v151_v4   ;;  %v167_v9 = vld [vmem:[%s679_s4] sm:$0xf]  ;;  %48 = vst.msk [vmem:[#allocation6] sm:$0x1] %vm47_vm11, %v568_v1 }
  0x16   :  { %477 = vmatprep.subr.mxu0 %v568_v1  ;;  %170 = vperm.xlu1 %516, %v167_v9   ;;  %v166_v21 = vld [vmem:[%s678_s3] sm:$0xf]  ;;  %v348_v35 = vmul.u32 8, %v347_v33  ;;  %v345_v36 = vadd.s32 8, %v261_v34  ;;  %v262_v41 = vsub.s32 0, %v261_v34 }
  0x17   :  { %v253_v30 = vld [vmem:[%s680_s5] sm:$0x1]  ;;  %s441_s5 = sshll.u32 %s572_s1, 4  ;;  %s442_s5 = int_to_ptr.vmem [resolvable:$true] %s441_s5 }
  0x18   :  { %v351_v37 = vadd.s32 8, %v348_v35  ;;  %vm350_vm5 = vcmp.ge.s32.totalorder %v345_v36, %v348_v35  ;;  %vm349_vm8 = vcmp.ge.s32.totalorder %v261_v34, %v348_v35  ;;  %s541_s21 = scalar_lea.vmem %s442_s5, 16  ;;  %s545_s22 = scalar_lea.vmem %s442_s5, 32 }
  0x19   :  { %478 = vmatpush3.xpose.msk.msra.mxu0 %vm54_vm1, %v49_v5  ;;  %154 = vperm.xlu0 %515, %v150_v6   ;;  %p542_p5 = scmp.ne.s32.totalorder %s442_s5, %s541_s21  ;;  %p546_p6 = scmp.lt.s32.totalorder %s442_s5, %s442_s5 }
  0x1a   :  { %257 = vperm.xlu1 %516, %v254_v10   ;;  %vm353_vm6 = vcmp.lt.s32.totalorder %v345_v36, %v351_v37  ;;  %vm352_vm9 = vcmp.lt.s32.totalorder %v261_v34, %v351_v37  ;;  %p547_p7 = scmp.lt.s32.totalorder %s545_s22, %s541_s21 }
  0x1b   :  { %vm355_vm7 = vmand %vm350_vm5, %vm353_vm6 }
  0x1c   :  { %480 = vmatmul.mubr.msk.f32.vlgmr.msra.gmra.mxu0 %vm54_vm1, %v51_v7  ;;  %vm354_vm10 = vmand %vm349_vm8, %vm352_vm9  ;;  %v358_v48 = vld [vmem:[#allocation6] sm:$0x1]  ;;  %p548_p8 = por %p547_p7, %p546_p6 }
  0x1d   :  { %482 = vmatprep.mubr.msk.f32.mxu0 %vm569_vm0, %v568_v1 }
  0x1e   :  { %p549_p9 = pnand %p548_p8, %p542_p5 }
  0x20   :  { %483 = vmatmul.mubr.msk.f32.gmra.mxu0 %vm54_vm1, %v52_v8 }
  0x21   :  { %485 = vmatprep.mubr.msk.f32.mxu0 %vm569_vm0, %v568_v1 }
  0x24   :  { %486 = vmatmul.mubr.msk.f32.gmra.mxu0 %vm54_vm1, %v53_v22 }
  0x90   :  { %v160_v11 = vpop.permute.xlu0 %159 }
  0x91   :  { %v171_v23 = vpop.permute.xlu1 %170 }
  0x94   :  { %v155_v13 = vpop.permute.xlu0 %154 }
  0x95   :  { %v258_v42 = vpop.permute.xlu1 %257 }
  0x96   :  { %v263_v43 = vrot.slane %v258_v42, %v262_v41 }
  0xdc   :  { %v136_v12 = vpop.f32.mrf.mxu0 }
  0xdd   :  { %v162_v16 = vadd.f32 %v155_v13, %v136_v12 }
  0xde   :  { %v481_v14 = vpop.f32.mrf.mxu0 }
  0xdf   :  { %v164_v20 = vmax.f32 %v162_v16, 0.0 }
  0xe0   :  { %v141_v15 = vpop.f32.mrf.mxu0 }
  0xe1   :  { %v163_v17 = vadd.f32 %v160_v11, %v141_v15 }
  0xe2   :  { %v484_v18 = vpop.f32.mrf.mxu0 }
  0xe3   :  { %v165_v19 = vmax.f32 %v163_v17, 0.0 }
  0xe4   :  { %v146_v38 = vpop.f32.mrf.mxu0 }
  0xe5   :  { %489 = vmatpush3.msra.mxu1 %v165_v19 }
  0xe6   :  { %490 = vmatprep.subr.mxu1 %v568_v1  ;;  %v487_v40 = vpop.f32.mrf.mxu0 }
  0xe7   :  { %491 = vmatpush3.msra.mxu1 %v164_v20 }
  0xe8   :  { %493 = vmatmul.mubr.msk.f32.vlgmr.msra.gmra.mxu1 %vm173_vm2, %v166_v21  ;;  %495 = vmatprep.subr.mxu1 %v568_v1 }
  0xe9   :  { %497 = vmatprep.mubr.msk.f32.mxu1 %vm569_vm0, %v568_v1 }
 0x1a8   :  { %v243_v24 = vpop.f32.mrf.mxu1 }
 0x1a9   :  { %v244_v25 = vadd.f32 %v243_v24, %v171_v23 }
 0x1aa   :  { %v494_v26 = vpop.f32.mrf.mxu1 }
 0x1ab   :  { %v456_v27 = vmul.f32 -1.442695, %v244_v25 }
 0x1ad   :  { %517 = vpow2.f32 %v456_v27 }
 0x1ba   :  { %v518_v28 = vpop.eup %517 }
 0x1bb   :  { %v250_v29 = vadd.f32 1.0, %v518_v28 }
 0x1bd   :  { %519 = vrcp.f32 %v250_v29 }
 0x1ca   :  { %v520_v31 = vpop.eup %519 }
 0x1cb   :  { %496 = vmatpush3.msk.msra.mxu1 %vm268_vm3, %v520_v31 }
 0x1cc   :  { %498 = vmatmul.mubr.msk.f32.vlgmr.msra.gmra.mxu1 %vm264_vm4, %v253_v30  ;;  %500 = vmatprep.subr.mxu1 %v568_v1 }
 0x1cd   :  { %504 = vmatprep.mubr.msk.f32.mxu1 %vm569_vm0, %v568_v1  ;;  %501 = vmatpush3.msk.msra.mxu1 %vm355_vm7, %v571_v39 }
 0x1ce   :  { %502 = vmatprep.subr.mxu1 %v568_v1 }
 0x1cf   :  { %503 = vmatpush3.msk.msra.mxu1 %vm354_vm10, %v571_v39 }
 0x28c   :  { %v338_v44 = vpop.f32.mrf.mxu1 }
 0x28d   :  { %v339_v45 = vadd.f32 %v338_v44, %v263_v43 }
 0x28e   :  { %v499_v46 = vpop.f32.mrf.mxu1 }
 0x28f   :  { %v342_v47 = vmul.f32 %v339_v45, %v146_v38 }
 0x291   :  { %505 = vmatmul.mubr.msk.f32.vlgmr.msra.gmra.mxu1 %vm173_vm2, %v342_v47 }
 0x351   :  { %v428_v49 = vpop.f32.mrf.mxu1 }
 0x352   :  { %v432_v50 = vadd.f32 %v428_v49, %v358_v48 }
 0x353   :  { %v506_v51 = vpop.f32.mrf.mxu1 }
 0x354   :  { %434 = vst.msk [vmem:[#allocation6] sm:$0x1] %vm47_vm11, %v432_v50 }
 0x355   :  { %552 = shalt.err (!%p549_p9)
}
 0x356   :  { %444 = dma.vmem_to_hbm [thread:$0]  %s442_s5, 16, %s682_s7, [#allocation5]  }
 0x357   :  { %563 = dma.done.wait [#allocation5], 16  }
 0x358   :  { %564 = vsyncadd [#allocation5], 4294967280 }
 0x359   :  { %448 = vsyncpa [#allocation4], 1 }
 0x35a   :  { %449 = vsyncpa [#allocation5], 1 }

</bundles_post_ra>
